<compile_context>
chip_gen: v6e
topology: v6e:2x2x1
jax: 0.10.0
libtpu: 0.0.40
codegen_flags: <defaults>
</compile_context>

<pallas_src>
import math
import numpy as np

import jax
import jax.numpy as jnp
from jax.experimental import pallas as pl
from jax.experimental.pallas import tpu as pltpu

WINDOW_SIZE = 11
PAD = WINDOW_SIZE // 2
SIGMA = 1.5
C1 = 0.01 ** 2
C2 = 0.03 ** 2


def _gaussian_1d(window_size: int, sigma: float) -> np.ndarray:
    """Same construction as gaussian() in the PyTorch module."""
    g = np.array(
        [math.exp(-((x - window_size // 2) ** 2) / float(2 * sigma ** 2))
         for x in range(window_size)],
        dtype=np.float64,
    )
    return (g / g.sum()).astype(np.float32)


def _conv_matrix(n: int, g: np.ndarray) -> np.ndarray:
    """Banded Toeplitz matrix T (n, n) with T[i, i+k-PAD] = g[k].

    Left-multiplying (T @ X) convolves each column of X with g using zero
    padding; right-multiplying (X @ T) convolves each row (g is symmetric).
    """
    T = np.zeros((n, n), dtype=np.float32)
    for i in range(n):
        for k in range(len(g)):
            j = i + k - PAD
            if 0 <= j < n:
                T[i, j] = g[k]
    return T


def _make_ssim_kernel(H: int, W: int):
    inv_hw = 1.0 / float(H * W)

    def kernel(av_ref, ah_ref, img1_ref, img2_ref, out_ref):
        # av_ref: (H, H) vertical conv matrix, ah_ref: (W, W) horizontal,
        # img*_ref block: (1, H, W), out_ref block: (1, 1, 1).
        Av = av_ref[...]
        Ah = ah_ref[...]
        x1 = img1_ref[0].astype(jnp.float32)
        x2 = img2_ref[0].astype(jnp.float32)

        def gconv(p):
            # Separable Gaussian conv on the MXU: (H,H)@(H,W) then (H,W)@(W,W).
            t = jnp.dot(Av, p, preferred_element_type=jnp.float32)
            return jnp.dot(t, Ah, preferred_element_type=jnp.float32)

        mu1 = gconv(x1)
        mu2 = gconv(x2)
        s11 = gconv(x1 * x1)
        s22 = gconv(x2 * x2)
        s12 = gconv(x1 * x2)

        mu1_sq = mu1 * mu1
        mu2_sq = mu2 * mu2
        mu1_mu2 = mu1 * mu2
        sigma1_sq = s11 - mu1_sq
        sigma2_sq = s22 - mu2_sq
        sigma12 = s12 - mu1_mu2

        num = (2.0 * mu1_mu2 + C1) * (2.0 * sigma12 + C2)
        den = (mu1_sq + mu2_sq + C1) * (sigma1_sq + sigma2_sq + C2)
        ssim = num * pl.reciprocal(den, approx=True)

        # Per-plane mean only; no full ssim_map writeback to HBM.
        out_ref[...] = jnp.broadcast_to(
            jnp.sum(ssim) * inv_hw, (1, 1, 1)
        ).astype(out_ref.dtype)

    return kernel


def ssim_pallas(img1: jax.Array, img2: jax.Array, size_average: bool = True):
    """SSIM matching the PyTorch module's forward (float32, NCHW)."""
    B, C, H, W = img1.shape
    BC = B * C

    g = _gaussian_1d(WINDOW_SIZE, SIGMA)
    Av = jnp.asarray(_conv_matrix(H, g))   # (H, H)
    Ah = jnp.asarray(_conv_matrix(W, g))   # (W, W), symmetric

    x1 = img1.reshape(BC, H, W).astype(jnp.float32)
    x2 = img2.reshape(BC, H, W).astype(jnp.float32)

    kernel = _make_ssim_kernel(H, W)

    # Scoped VMEM budgeting: only raise the limit when the per-step working set
    # (conv matrices + double-buffered input planes + elementwise temps) is big
    # enough to outgrow the v5e/v6e scoped defaults; cap below v7x's 64 MiB.
    per_step_bytes = 4 * (H * H + W * W + 2 * 2 * H * W + 10 * H * W)
    compiler_kwargs = dict(dimension_semantics=("parallel",))
    if per_step_bytes > 8 * 2 ** 20:
        compiler_kwargs["vmem_limit_bytes"] = int(
            min(per_step_bytes * 3, 60 * 2 ** 20))

    per_plane_mean = pl.pallas_call(
        kernel,
        out_shape=jax.ShapeDtypeStruct((BC, 1, 1), jnp.float32),
        grid_spec=pltpu.PrefetchScalarGridSpec(
            num_scalar_prefetch=0,
            grid=(BC,),
            in_specs=[
                pl.BlockSpec((H, H), lambda i: (0, 0)),       # Av (resident)
                pl.BlockSpec((W, W), lambda i: (0, 0)),       # Ah (resident)
                pl.BlockSpec((1, H, W), lambda i: (i, 0, 0)),  # img1 plane
                pl.BlockSpec((1, H, W), lambda i: (i, 0, 0)),  # img2 plane
            ],
            out_specs=pl.BlockSpec((1, 1, 1), lambda i: (i, 0, 0)),
        ),
        compiler_params=pltpu.CompilerParams(**compiler_kwargs),
    )(Av, Ah, x1, x2)

    per_plane_mean = per_plane_mean.reshape(B, C)
    if size_average:
        # Mean of per-plane means == global mean (all planes have H*W pixels).
        return jnp.mean(per_plane_mean)
    else:
        # ssim_map.mean(1).mean(1).mean(1) == per-batch mean over (C, H, W).
        return jnp.mean(per_plane_mean, axis=1)


def _ssim_reference(img1, img2):
    """Pure-JAX reference using lax conv (for a sanity check)."""
    B, C, H, W = img1.shape
    g = _gaussian_1d(WINDOW_SIZE, SIGMA)
    w2d = jnp.asarray(np.outer(g, g).astype(np.float32))
    win = jnp.broadcast_to(w2d, (C, 1, WINDOW_SIZE, WINDOW_SIZE))

    def conv(x):
        return jax.lax.conv_general_dilated(
            x, win, window_strides=(1, 1), padding=((PAD, PAD), (PAD, PAD)),
            feature_group_count=C,
            dimension_numbers=("NCHW", "OIHW", "NCHW"))

    mu1, mu2 = conv(img1), conv(img2)
    mu1_sq, mu2_sq, mu1_mu2 = mu1 * mu1, mu2 * mu2, mu1 * mu2
    sigma1_sq = conv(img1 * img1) - mu1_sq
    sigma2_sq = conv(img2 * img2) - mu2_sq
    sigma12 = conv(img1 * img2) - mu1_mu2
    ssim_map = ((2 * mu1_mu2 + C1) * (2 * sigma12 + C2) /
                ((mu1_sq + mu2_sq + C1) * (sigma1_sq + sigma2_sq + C2)))
    return jnp.mean(ssim_map)


if __name__ == "__main__":
    key = jax.random.PRNGKey(0)
    k1, k2 = jax.random.split(key)
    B, C, H, W = 2, 4, 16, 16
    img1 = jax.random.uniform(k1, (B, C, H, W), dtype=jnp.float32)
    img2 = jax.random.uniform(k2, (B, C, H, W), dtype=jnp.float32)

    out = ssim_pallas(img1, img2, size_average=True)
    out = jax.block_until_ready(out)

    ref = jax.block_until_ready(_ssim_reference(img1, img2))
    assert jnp.isfinite(out), "non-finite SSIM"
    assert abs(float(out) - float(ref)) < 1e-3, (float(out), float(ref))

    print("KERNEL_OK")
</pallas_src>

<mosaic_0001>
module attributes {stable_mosaic.version = 11 : i64} {
  func.func @kernel(%arg0: i32, %arg1: memref<16x16xf32, #tpu.memory_space<vmem>>, %arg2: memref<16x16xf32, #tpu.memory_space<vmem>>, %arg3: memref<1x16x16xf32, #tpu.memory_space<vmem>>, %arg4: memref<1x16x16xf32, #tpu.memory_space<vmem>>, %arg5: memref<1x1x1xf32, #tpu.memory_space<vmem>>) attributes {dimension_semantics = [#tpu.dimension_semantics<parallel>], iteration_bounds = array<i64: 8>, scalar_prefetch = 0 : i64, scratch_operands = 0 : i64, tpu.core_type = #tpu.core_type<tc>, window_params = [{pipeline_mode = #tpu.pipeline_mode<synchronous>, transform_indices = @transform_0, window_bounds = array<i64: 16, 16>}, {pipeline_mode = #tpu.pipeline_mode<synchronous>, transform_indices = @transform_1, window_bounds = array<i64: 16, 16>}, {transform_indices = @transform_2, window_bounds = array<i64: 1, 16, 16>}, {transform_indices = @transform_3, window_bounds = array<i64: 1, 16, 16>}, {transform_indices = @transform_4, window_bounds = array<i64: 1, 1, 1>}]} {
    %c0 = arith.constant 0 : index
    %c0_0 = arith.constant 0 : index
    %0 = vector.load %arg1[%c0, %c0_0] : memref<16x16xf32, #tpu.memory_space<vmem>>, vector<16x16xf32>
    %c0_1 = arith.constant 0 : index
    %c0_2 = arith.constant 0 : index
    %1 = vector.load %arg2[%c0_1, %c0_2] : memref<16x16xf32, #tpu.memory_space<vmem>>, vector<16x16xf32>
    %c0_3 = arith.constant 0 : index
    %c0_4 = arith.constant 0 : index
    %c0_5 = arith.constant 0 : index
    %2 = vector.load %arg3[%c0_3, %c0_4, %c0_5] : memref<1x16x16xf32, #tpu.memory_space<vmem>>, vector<1x16x16xf32>
    %3 = vector.shape_cast %2 : vector<1x16x16xf32> to vector<16x16xf32>
    %c0_6 = arith.constant 0 : index
    %c0_7 = arith.constant 0 : index
    %c0_8 = arith.constant 0 : index
    %4 = vector.load %arg4[%c0_6, %c0_7, %c0_8] : memref<1x16x16xf32, #tpu.memory_space<vmem>>, vector<1x16x16xf32>
    %5 = vector.shape_cast %4 : vector<1x16x16xf32> to vector<16x16xf32>
    %cst = arith.constant dense<0.000000e+00> : vector<16x16xf32>
    %6 = tpu.matmul %0, %3, %cst {dimension_numbers = #tpu.dot_dimension_numbers<[1], [0], [0], [1], [0, 0, 1, 1], [], []>} : vector<16x16xf32>, vector<16x16xf32>, vector<16x16xf32> -> vector<16x16xf32>
    %cst_9 = arith.constant dense<0.000000e+00> : vector<16x16xf32>
    %7 = tpu.matmul %6, %1, %cst_9 {dimension_numbers = #tpu.dot_dimension_numbers<[1], [0], [0], [1], [0, 0, 1, 1], [], []>} : vector<16x16xf32>, vector<16x16xf32>, vector<16x16xf32> -> vector<16x16xf32>
    %cst_10 = arith.constant dense<0.000000e+00> : vector<16x16xf32>
    %8 = tpu.matmul %0, %5, %cst_10 {dimension_numbers = #tpu.dot_dimension_numbers<[1], [0], [0], [1], [0, 0, 1, 1], [], []>} : vector<16x16xf32>, vector<16x16xf32>, vector<16x16xf32> -> vector<16x16xf32>
    %cst_11 = arith.constant dense<0.000000e+00> : vector<16x16xf32>
    %9 = tpu.matmul %8, %1, %cst_11 {dimension_numbers = #tpu.dot_dimension_numbers<[1], [0], [0], [1], [0, 0, 1, 1], [], []>} : vector<16x16xf32>, vector<16x16xf32>, vector<16x16xf32> -> vector<16x16xf32>
    %10 = arith.mulf %3, %3 : vector<16x16xf32>
    %cst_12 = arith.constant dense<0.000000e+00> : vector<16x16xf32>
    %11 = tpu.matmul %0, %10, %cst_12 {dimension_numbers = #tpu.dot_dimension_numbers<[1], [0], [0], [1], [0, 0, 1, 1], [], []>} : vector<16x16xf32>, vector<16x16xf32>, vector<16x16xf32> -> vector<16x16xf32>
    %cst_13 = arith.constant dense<0.000000e+00> : vector<16x16xf32>
    %12 = tpu.matmul %11, %1, %cst_13 {dimension_numbers = #tpu.dot_dimension_numbers<[1], [0], [0], [1], [0, 0, 1, 1], [], []>} : vector<16x16xf32>, vector<16x16xf32>, vector<16x16xf32> -> vector<16x16xf32>
    %13 = arith.mulf %5, %5 : vector<16x16xf32>
    %cst_14 = arith.constant dense<0.000000e+00> : vector<16x16xf32>
    %14 = tpu.matmul %0, %13, %cst_14 {dimension_numbers = #tpu.dot_dimension_numbers<[1], [0], [0], [1], [0, 0, 1, 1], [], []>} : vector<16x16xf32>, vector<16x16xf32>, vector<16x16xf32> -> vector<16x16xf32>
    %cst_15 = arith.constant dense<0.000000e+00> : vector<16x16xf32>
    %15 = tpu.matmul %14, %1, %cst_15 {dimension_numbers = #tpu.dot_dimension_numbers<[1], [0], [0], [1], [0, 0, 1, 1], [], []>} : vector<16x16xf32>, vector<16x16xf32>, vector<16x16xf32> -> vector<16x16xf32>
    %16 = arith.mulf %3, %5 : vector<16x16xf32>
    %cst_16 = arith.constant dense<0.000000e+00> : vector<16x16xf32>
    %17 = tpu.matmul %0, %16, %cst_16 {dimension_numbers = #tpu.dot_dimension_numbers<[1], [0], [0], [1], [0, 0, 1, 1], [], []>} : vector<16x16xf32>, vector<16x16xf32>, vector<16x16xf32> -> vector<16x16xf32>
    %cst_17 = arith.constant dense<0.000000e+00> : vector<16x16xf32>
    %18 = tpu.matmul %17, %1, %cst_17 {dimension_numbers = #tpu.dot_dimension_numbers<[1], [0], [0], [1], [0, 0, 1, 1], [], []>} : vector<16x16xf32>, vector<16x16xf32>, vector<16x16xf32> -> vector<16x16xf32>
    %19 = arith.mulf %7, %7 : vector<16x16xf32>
    %20 = arith.mulf %9, %9 : vector<16x16xf32>
    %21 = arith.mulf %7, %9 : vector<16x16xf32>
    %22 = arith.subf %12, %19 : vector<16x16xf32>
    %23 = arith.subf %15, %20 : vector<16x16xf32>
    %24 = arith.subf %18, %21 : vector<16x16xf32>
    %cst_18 = arith.constant 2.000000e+00 : f32
    %25 = vector.broadcast %cst_18 : f32 to vector<16x16xf32>
    %26 = arith.mulf %25, %21 : vector<16x16xf32>
    %cst_19 = arith.constant 9.99999974E-5 : f32
    %27 = vector.broadcast %cst_19 : f32 to vector<16x16xf32>
    %28 = arith.addf %26, %27 : vector<16x16xf32>
    %cst_20 = arith.constant 2.000000e+00 : f32
    %29 = vector.broadcast %cst_20 : f32 to vector<16x16xf32>
    %30 = arith.mulf %29, %24 : vector<16x16xf32>
    %cst_21 = arith.constant 8.99999984E-4 : f32
    %31 = vector.broadcast %cst_21 : f32 to vector<16x16xf32>
    %32 = arith.addf %30, %31 : vector<16x16xf32>
    %33 = arith.mulf %28, %32 : vector<16x16xf32>
    %34 = arith.addf %19, %20 : vector<16x16xf32>
    %cst_22 = arith.constant 9.99999974E-5 : f32
    %35 = vector.broadcast %cst_22 : f32 to vector<16x16xf32>
    %36 = arith.addf %34, %35 : vector<16x16xf32>
    %37 = arith.addf %22, %23 : vector<16x16xf32>
    %cst_23 = arith.constant 8.99999984E-4 : f32
    %38 = vector.broadcast %cst_23 : f32 to vector<16x16xf32>
    %39 = arith.addf %37, %38 : vector<16x16xf32>
    %40 = arith.mulf %36, %39 : vector<16x16xf32>
    %41 = tpu.reciprocal %40 {approx = true} : vector<16x16xf32> -> vector<16x16xf32>
    %42 = arith.mulf %33, %41 : vector<16x16xf32>
    %43 = vector.shape_cast %42 : vector<16x16xf32> to vector<1x16x16xf32>
    %cst_24 = arith.constant dense<0.000000e+00> : vector<1xf32>
    %44 = vector.multi_reduction <add>, %43, %cst_24 [1, 2] : vector<1x16x16xf32> to vector<1xf32>
    %45 = vector.shape_cast %44 : vector<1xf32> to vector<1x1x1xf32>
    %46 = vector.extract %45[0, 0, 0] : f32 from vector<1x1x1xf32>
    %cst_25 = arith.constant 3.906250e-03 : f32
    %47 = arith.mulf %46, %cst_25 : f32
    %48 = vector.broadcast %47 : f32 to vector<1x1x1xf32>
    %c0_26 = arith.constant 0 : index
    %c0_27 = arith.constant 0 : index
    %c0_28 = arith.constant 0 : index
    %49 = vector.load %arg5[%c0_26, %c0_27, %c0_28] : memref<1x1x1xf32, #tpu.memory_space<vmem>>, vector<1x1x1xf32>
    tpu.vector_store %arg5[%c0_26, %c0_27, %c0_28], %48 {strides = array<i32>} : memref<1x1x1xf32, #tpu.memory_space<vmem>>, vector<1x1x1xf32>,
    return
  }
  func.func @transform_0(%arg0: i32) -> (i32, i32) {
    %c0_i32 = arith.constant 0 : i32
    %c0_i32_0 = arith.constant 0 : i32
    %c0_i32_1 = arith.constant 0 : i32
    return %c0_i32, %c0_i32_0 : i32, i32
  }
  func.func @transform_1(%arg0: i32) -> (i32, i32) {
    %c0_i32 = arith.constant 0 : i32
    %c0_i32_0 = arith.constant 0 : i32
    %c0_i32_1 = arith.constant 0 : i32
    return %c0_i32, %c0_i32_0 : i32, i32
  }
  func.func @transform_2(%arg0: i32) -> (i32, i32, i32) {
    %c0_i32 = arith.constant 0 : i32
    %c0_i32_0 = arith.constant 0 : i32
    %c0_i32_1 = arith.constant 0 : i32
    return %arg0, %c0_i32, %c0_i32_0 : i32, i32, i32
  }
  func.func @transform_3(%arg0: i32) -> (i32, i32, i32) {
    %c0_i32 = arith.constant 0 : i32
    %c0_i32_0 = arith.constant 0 : i32
    %c0_i32_1 = arith.constant 0 : i32
    return %arg0, %c0_i32, %c0_i32_0 : i32, i32, i32
  }
  func.func @transform_4(%arg0: i32) -> (i32, i32, i32) {
    %c0_i32 = arith.constant 0 : i32
    %c0_i32_0 = arith.constant 0 : i32
    %c0_i32_1 = arith.constant 0 : i32
    return %arg0, %c0_i32, %c0_i32_0 : i32, i32, i32
  }
}

</mosaic_0001>

<bundles_post_ra>
// kernel: tpu_custom_call.1
= control target key start
LH: loop header
LB: loop body
LE: loop exit
PB: predicated region body
PF: predicated region fallthrough
CT: control target
= control target key end

     0   :  { %9 = vsyncpa [#allocation3], 0  ;;  %s1859_s0 = inlined_call_operand.hbm [shape: f32[16,16], index: 0, kind: input, shape index: {}]   ;;  %s1860_s1 = inlined_call_operand.hbm [shape: f32[16,16], index: 1, kind: input, shape index: {}]   ;;  %s1861_s2 = inlined_call_operand.hbm [shape: f32[8,16,16], index: 2, kind: input, shape index: {}]   ;;  %s1862_s3 = inlined_call_operand.hbm [shape: f32[8,16,16], index: 3, kind: input, shape index: {}]   ;;  %s1863_s4 = inlined_call_operand.vmem [shape: f32[8,1,1], index: 4, kind: output, shape index: {}]  }
   0x1   :  { %10 = vsyncpa [#allocation5], 0  ;;  %s1635_s15 = smov 0   ;;  %s1637_s16 = smov 0  }
   0x2   :  { %s1639_s17 = smov 0   ;;  %s1641_s18 = smov 0  }
   0x3 LB: > { %s1654_s19 = sadd.s32 4294967295, %s1602_s18   ;;  %s1657_s20 = sadd.s32 1, %s1602_s18   ;;  %s1602_s18 = sphi %s1641_s18, %s1883_s18   ;;  %s1598_s17 = sphi %s1639_s17, %s1882_s17   ;;  %s1594_s16 = sphi %s1637_s16, %s1881_s16   ;;  %s1590_s15 = sphi %s1635_s15, %s1880_s15  }
   0x4   : > { %s62_s21 = ssub.s32 %s1602_s18, %s1657_s20  ;;  %s65_s22 = sadd.s32 1, %s1598_s17 }
   0x5   : > { %p63_p0 = scmp.eq.s32.totalorder %s62_s21, 0  ;;  %p72_p1 = scmp.ne.s32.totalorder %s1598_s17, %s1594_s16 }
   0x6   : > { %p73_p2 = scmp.eq.s32.totalorder %s1602_s18, 0  ;;  %p78_p3 = scmp.ne.s32.totalorder %s1594_s16, %s1590_s15 }
   0x7   : > { %s1667_s23 = scalar_select %p63_p0, %s1598_s17, %s65_s22  }
   0x8   : > { %p1669_p4 = por %p73_p2, %p72_p1  ;;  %p1864_p5 = scmp.eq.s32.totalorder %s1654_s19, 0 }
   0x9   : > { %p1230_p6 = scmp.ge.s32.totalorder %s1602_s18, 1  ;;  %p141_p7 = scmp.lt.s32.totalorder %s1602_s18, 9 }
   0xa   : > { %p1678_p8 = por %p1864_p5, %p78_p3  ;;  %s1604_s27 = smov [#allocation2]  }
   0xb   : > { %p1682_p9 = pnand %p1230_p6, %p141_p7  ;;  %s153_s28 = sshll.u32 %s1604_s27, 4  ;;  %s154_s28 = int_to_ptr.vmem [resolvable:$true] %s153_s28 }
   0xc   : > { %s1869_s25 = scalar_select %p1678_p8, 1, 0 }
   0xd   : > { %s1870_s26 = scalar_select %p1682_p9, 1, 0 }
   0xe   : > { %p1393_p10 = pneg %p1682_p9  ;;  %p1409_p12 = scmp.lt.s32.totalorder %s1602_s18, 8 }
   0xf   : > { %s180_s30 = sand.u32 1, %s1602_s18   ;;  %s182_s5 = sand.u32 1, %s1598_s17  }
  0x10   : > { %p1690_p11 = pnand %p1393_p10, %p1864_p5  ;;  %p1699_p13 = pnand %p1409_p12, %p1669_p4 }
  0x11   : > { %s1463_s7 = scalar_lea.vmem %s154_s28, 256  ;;  %p1471_p6 = scmp.lt.s32.totalorder %s154_s28, %s154_s28 }
  0x12   : > { %p1865_p0 = pneg %p1690_p11  ;;  %p1464_p1 = scmp.ne.s32.totalorder %s154_s28, %s1463_s7 }
  0x13   : > { %p1472_p7 = scmp.lt.s32.totalorder %s1463_s7, %s1463_s7 }
  0x14   : > { %p1466_p2 = pnand %p1464_p1, %p1865_p0 }
  0x15   : > { %p1473_p10 = por %p1472_p7, %p1471_p6 }
  0x16   : > { %p1467_p3 = pneg %p1466_p2 }
  0x18   : > { %p1474_p5 = pnand %p1473_p10, %p1467_p3 }
  0x1a   : > { %1477 = shalt.err (!%p1474_p5)
}
  0x1b   : > { %s1605_s8 = smov 128   ;;  %s1606_s9 = smov 8  }
  0x1c   : > { %1396 = dma.hbm_to_vmem [thread:$0]  (!%p1690_p11), %s1859_s0, 256, %s154_s28, [#allocation3], %s1605_s8, %s1605_s8, %s1606_s9  }
  0x1d   : > { %s1716_s12 = sshll.u32 %s182_s5, 4  ;;  %s1267_s13 = sshll.u32 %s1602_s18, 8 }
  0x1e   : > { %s1724_s21 = scalar_lea.hbm %s1861_s2, %s1267_s13  ;;  %s184_s22 = scalar_lea.vmem [#allocation6], %s1716_s12 }
  0x1f   : > { %s191_s24 = sshll.u32 %s184_s22, 4  ;;  %s1607_s27 = smov [#allocation4]   ;;  %s1727_s24 = int_to_ptr.vmem [resolvable:$true] %s191_s24 }
  0x20   : > { %s1729_s7 = sshll.u32 %s1607_s27, 4  ;;  %s1731_s28 = scalar_lea.sflag [#allocation3], %s180_s30  ;;  %s167_s7 = int_to_ptr.vmem [resolvable:$true] %s1729_s7 }
  0x21   : > { %s1478_s5 = scalar_lea.hbm %s1724_s21, 256  ;;  %p1480_p5 = pneg %p1699_p13 }
  0x22   : > { %p1479_p4 = scmp.ne.s32.totalorder %s1724_s21, %s1478_s5  ;;  %s1483_s14 = scalar_lea.hbm %s1861_s2, 2048 }
  0x23   : > { %p1484_p2 = scmp.lt.s32.totalorder %s1724_s21, %s1861_s2  ;;  %p1485_p3 = scmp.lt.s32.totalorder %s1483_s14, %s1478_s5 }
  0x24   : > { %p1481_p12 = pnand %p1480_p5, %p1479_p4 }
  0x25   : > { %p1486_p6 = por %p1485_p3, %p1484_p2 }
  0x26   : > { %p1482_p1 = pneg %p1481_p12 }
  0x28   : > { %p1487_p7 = pnand %p1486_p6, %p1482_p1 }
  0x2a   : > { %1490 = shalt.err (!%p1487_p7)
}
  0x2b   : > { %s1491_s30 = scalar_lea.vmem %s1727_s24, 256  ;;  %s1608_s27 = smov [#allocation6]  }
  0x2c   : > { %p1492_p10 = scmp.ne.s32.totalorder %s1727_s24, %s1491_s30  ;;  %s1496_s10 = sshll.u32 %s1608_s27, 4  ;;  %s1497_s10 = int_to_ptr.vmem [resolvable:$false] %s1496_s10 }
  0x2d   : > { %s1498_s11 = scalar_lea.vmem %s1497_s10, 512  ;;  %p1499_p0 = scmp.lt.s32.totalorder %s1727_s24, %s1497_s10 }
  0x2e   : > { %p1494_p4 = pnand %p1492_p10, %p1480_p5  ;;  %p1500_p8 = scmp.lt.s32.totalorder %s1498_s11, %s1491_s30 }
  0x30   : > { %p1495_p12 = pneg %p1494_p4  ;;  %p1501_p9 = por %p1500_p8, %p1499_p0 }
  0x32   : > { %p1502_p2 = pnand %p1501_p9, %p1495_p12 }
  0x34   : > { %1505 = shalt.err (!%p1502_p2)
}
  0x35   : > { %1403 = dma.hbm_to_vmem [thread:$0]  (!%p1699_p13), %s1724_s21, 256, %s1727_s24, %s1731_s28, %s1605_s8, %s1605_s8, %s1606_s9  }
  0x36   : > { %s1517_s5 = scalar_lea.vmem %s167_s7, 256  ;;  %p1873_p3 = pneg %p1690_p11 }
  0x37   : > { %p1518_p1 = scmp.ne.s32.totalorder %s167_s7, %s1517_s5  ;;  %p1525_p9 = scmp.lt.s32.totalorder %s167_s7, %s167_s7 }
  0x38   : > { %p1526_p0 = scmp.lt.s32.totalorder %s1517_s5, %s1517_s5 }
  0x39   : > { %p1520_p6 = pnand %p1518_p1, %p1873_p3 }
  0x3a   : > { %p1527_p7 = por %p1526_p0, %p1525_p9 }
  0x3b   : > { %p1521_p8 = pneg %p1520_p6 }
  0x3d   : > { %p1528_p10 = pnand %p1527_p7, %p1521_p8 }
  0x3f   : > { %1531 = shalt.err (!%p1528_p10)
}
  0x40   : > { %1399 = dma.hbm_to_vmem [thread:$0]  (!%p1690_p11), %s1860_s1, 256, %s167_s7, [#allocation5], %s1605_s8, %s1605_s8, %s1606_s9  }
  0x41   : > { %s1778_s22 = scalar_lea.hbm %s1862_s3, %s1267_s13  ;;  %s205_s29 = scalar_lea.vmem [#allocation7], %s1716_s12 }
  0x42   : > { %s212_s30 = sshll.u32 %s205_s29, 4  ;;  %s1532_s27 = scalar_lea.hbm %s1778_s22, 256  ;;  %s213_s30 = int_to_ptr.vmem [resolvable:$true] %s212_s30 }
  0x43   : > { %p1533_p4 = scmp.ne.s32.totalorder %s1778_s22, %s1532_s27  ;;  %s1537_s18 = scalar_lea.hbm %s1862_s3, 2048 }
  0x44   : > { %p1538_p11 = scmp.lt.s32.totalorder %s1778_s22, %s1862_s3  ;;  %p1539_p1 = scmp.lt.s32.totalorder %s1537_s18, %s1532_s27 }
  0x45   : > { %p1535_p12 = pnand %p1533_p4, %p1480_p5 }
  0x46   : > { %p1540_p3 = por %p1539_p1, %p1538_p11 }
  0x47   : > { %p1536_p2 = pneg %p1535_p12 }
  0x49   : > { %p1541_p6 = pnand %p1540_p3, %p1536_p2 }
  0x4b   : > { %1544 = shalt.err (!%p1541_p6)
}
  0x4c   : > { %s1545_s12 = scalar_lea.vmem %s213_s30, 256  ;;  %s1609_s13 = smov [#allocation7]  }
  0x4d   : > { %p1546_p8 = scmp.ne.s32.totalorder %s213_s30, %s1545_s12  ;;  %s1550_s14 = sshll.u32 %s1609_s13, 4  ;;  %s1551_s14 = int_to_ptr.vmem [resolvable:$false] %s1550_s14 }
  0x4e   : > { %s1552_s15 = scalar_lea.vmem %s1551_s14, 512  ;;  %p1553_p7 = scmp.lt.s32.totalorder %s213_s30, %s1551_s14 }
  0x4f   : > { %p1548_p9 = pnand %p1546_p8, %p1480_p5  ;;  %p1554_p10 = scmp.lt.s32.totalorder %s1552_s15, %s1545_s12 }
  0x51   : > { %p1549_p0 = pneg %p1548_p9  ;;  %p1555_p4 = por %p1554_p10, %p1553_p7 }
  0x53   : > { %p1556_p12 = pnand %p1555_p4, %p1549_p0 }
  0x55   : > { %1559 = shalt.err (!%p1556_p12)
}
  0x56   : > { %1406 = dma.hbm_to_vmem [thread:$0]  (!%p1699_p13), %s1778_s22, 256, %s213_s30, %s1731_s28, %s1605_s8, %s1605_s8, %s1606_s9  }
  0x57   : > { %p1874_p5 = scmp.ne.s32.totalorder %s1870_s26, 0 }
  0x58   : > { %p1875_p2 = scmp.eq.s32.totalorder (!%p1874_p5), %s1654_s19, 0 }
  0x59   : > { %224 = sbr.rel (%p1874_p5) target bundleno = 742 (0x2e6), region = 36 }
  0x5e   : > { %1577 = dma.done.wait (%p1875_p2), [#allocation3], 256   ;;  %p1876_p11 = pmov %p1875_p2 }
  0x5f   : > { %p1877_p1 = pmov %p1875_p2 }
  0x60   : > { %1579 = vsyncadd (%p1876_p11), [#allocation3], 4294967040 }
  0x61   : > { %1581 = dma.done.wait (%p1877_p1), [#allocation5], 256   ;;  %p1878_p3 = pmov %p1877_p1 }
  0x62   : > { %s234_s6 = sand.u32 1, %s1654_s19   ;;  %s236_s8 = sand.u32 1, %s1594_s16  }
  0x63   : > { %1583 = vsyncadd (%p1878_p3), [#allocation5], 4294967040  ;;  %s1243_s9 = sshll.u32 %s236_s8, 4  ;;  %s235_s26 = scalar_lea.sflag [#allocation3], %s234_s6 }
  0x64   : > { %s238_s28 = scalar_lea.vmem [#allocation6], %s1243_s9  ;;  %p1879_p13 = scmp.ne.s32.totalorder %s1869_s25, 0 }
  0x66   : > { %1585 = dma.done.wait (%p1879_p13), %s235_s26, 512  }
  0x67   : > { %1587 = vsyncadd (%p1879_p13), %s235_s26, 4294966784  ;;  %vm286_vm0 = vcmask 130048   ;;  %v283_v0 = vld [vmem:[%s238_s28 + $0x8] sm:$0xff]  ;;  %v282_v1 = vld [vmem:[%s238_s28] sm:$0xff]  ;;  %s247_s21 = scalar_lea.vmem [#allocation7], %s1243_s9  ;;  %p275_p6 = scmp.lt.s32.totalorder %s1654_s19, 7 }
  0x68   : > { %v278_v2 = vld [vmem:[#allocation2] sm:$0xff]  ;;  %1309 = vmatprep.subr.mxu0 %v283_v0  ;;  %v279_v3 = vld [vmem:[#allocation2 + $0x8] sm:$0xff]  ;;  %v606_v6 = vmul.f32 %v283_v0, %v283_v0  ;;  %v605_v7 = vmul.f32 %v282_v1, %v282_v1  ;;  %v281_v12 = vld [vmem:[#allocation4 + $0x8] sm:$0xff]  ;;  %vm1129_vm1 = vcmask 0  }
  0x69   : > { %1313 = vmatprep.mubr.msk.f32.mxu0 %vm286_vm0, %v278_v2  ;;  %1310 = vmatpush3.msra.mxu0 %v283_v0  ;;  %v285_v4 = vld [vmem:[%s247_s21 + $0x8] sm:$0xff]  ;;  %v284_v5 = vld [vmem:[%s247_s21] sm:$0xff]  ;;  %s1885_s19 = smov (!%p275_p6, %s1654_s19), 7 }
  0x6a   : > { %1311 = vmatprep.subr.mxu0 %v282_v1  ;;  %v764_v8 = vmul.f32 %v285_v4, %v285_v4  ;;  %v763_v9 = vmul.f32 %v284_v5, %v284_v5  ;;  %v922_v10 = vmul.f32 %v285_v4, %v283_v0  ;;  %v921_v11 = vmul.f32 %v284_v5, %v282_v1  ;;  %v280_v13 = vld [vmem:[#allocation4] sm:$0xff]  ;;  %s277_s29 = scalar_lea.vmem %s1863_s4, %s1885_s19 }
  0x6b   : > { %1312 = vmatpush3.msra.mxu0 %v282_v1  ;;  %1316 = vmatprep.subr.mxu1 %v281_v12 }
  0x6c   : > { %1314 = vmatmul.mubr.msk.f32.vlgmr.msra.gmra.mxu0 %vm286_vm0, %v279_v3  ;;  %1323 = vmatprep.subr.mxu0 %v285_v4 }
  0x6d   : > { %1324 = vmatpush3.msra.mxu0 %v285_v4  ;;  %1327 = vmatprep.mubr.msk.f32.mxu0 %vm286_vm0, %v278_v2 }
  0x6e   : > { %1325 = vmatprep.subr.mxu0 %v284_v5  ;;  %1317 = vmatpush3.msra.mxu1 %v281_v12 }
  0x6f   : > { %1326 = vmatpush3.msra.mxu0 %v284_v5  ;;  %1318 = vmatprep.subr.mxu1 %v280_v13 }
  0x70   : > { %1328 = vmatmul.mubr.msk.f32.vlgmr.msra.gmra.mxu0 %vm286_vm0, %v279_v3  ;;  %1337 = vmatprep.subr.mxu0 %v606_v6 }
  0x71   : > { %1338 = vmatpush3.msra.mxu0 %v606_v6  ;;  %1341 = vmatprep.mubr.msk.f32.mxu0 %vm286_vm0, %v278_v2 }
  0x72   : > { %1339 = vmatprep.subr.mxu0 %v605_v7  ;;  %1319 = vmatpush3.msra.mxu1 %v280_v13 }
  0x73   : > { %1340 = vmatpush3.msra.mxu0 %v605_v7  ;;  %1330 = vmatprep.subr.mxu1 %v281_v12 }
  0x74   : > { %1342 = vmatmul.mubr.msk.f32.vlgmr.msra.gmra.mxu0 %vm286_vm0, %v279_v3  ;;  %1351 = vmatprep.subr.mxu0 %v764_v8 }
  0x75   : > { %1352 = vmatpush3.msra.mxu0 %v764_v8  ;;  %1355 = vmatprep.mubr.msk.f32.mxu0 %vm286_vm0, %v278_v2 }
  0x76   : > { %1353 = vmatprep.subr.mxu0 %v763_v9 }
  0x77   : > { %1354 = vmatpush3.msra.mxu0 %v763_v9 }
  0x78   : > { %1356 = vmatmul.mubr.msk.f32.vlgmr.msra.gmra.mxu0 %vm286_vm0, %v279_v3  ;;  %1365 = vmatprep.subr.mxu0 %v922_v10 }
  0x79   : > { %1366 = vmatpush3.msra.mxu0 %v922_v10  ;;  %1369 = vmatprep.mubr.msk.f32.mxu0 %vm286_vm0, %v278_v2 }
  0x7a   : > { %1367 = vmatprep.subr.mxu0 %v921_v11 }
  0x7b   : > { %1368 = vmatpush3.msra.mxu0 %v921_v11 }
  0x7c   : > { %1370 = vmatmul.mubr.msk.f32.vlgmr.msra.gmra.mxu0 %vm286_vm0, %v279_v3 }
 0x12c   : > { %v1315_v14 = vpop.f32.mrf.mxu0 }
 0x12e   : > { %v359_v15 = vpop.f32.mrf.mxu0 }
 0x12f   : > { %1320 = vmatprep.mubr.msk.f32.mxu1 %vm286_vm0, %v359_v15 }
 0x130   : > { %1321 = vmatmul.mubr.msk.f32.vlgmr.msra.gmra.mxu1 %vm286_vm0, %v1315_v14  ;;  %v1329_v16 = vpop.f32.mrf.mxu0 }
 0x131   : > { %1331 = vmatpush3.msra.mxu1 %v281_v12 }
 0x132   : > { %v515_v17 = vpop.f32.mrf.mxu0  ;;  %1332 = vmatprep.subr.mxu1 %v280_v13 }
 0x133   : > { %1333 = vmatpush3.msra.mxu1 %v280_v13  ;;  %1334 = vmatprep.mubr.msk.f32.mxu1 %vm286_vm0, %v515_v17 }
 0x134   : > { %1335 = vmatmul.mubr.msk.f32.vlgmr.msra.gmra.mxu1 %vm286_vm0, %v1329_v16  ;;  %v1343_v18 = vpop.f32.mrf.mxu0  ;;  %1344 = vmatprep.subr.mxu1 %v281_v12 }
 0x135   : > { %1345 = vmatpush3.msra.mxu1 %v281_v12 }
 0x136   : > { %v673_v19 = vpop.f32.mrf.mxu0  ;;  %1346 = vmatprep.subr.mxu1 %v280_v13 }
 0x137   : > { %1347 = vmatpush3.msra.mxu1 %v280_v13  ;;  %1348 = vmatprep.mubr.msk.f32.mxu1 %vm286_vm0, %v673_v19 }
 0x138   : > { %1349 = vmatmul.mubr.msk.f32.vlgmr.msra.gmra.mxu1 %vm286_vm0, %v1343_v18  ;;  %v1357_v20 = vpop.f32.mrf.mxu0  ;;  %1358 = vmatprep.subr.mxu1 %v281_v12 }
 0x139   : > { %1359 = vmatpush3.msra.mxu1 %v281_v12 }
 0x13a   : > { %v831_v21 = vpop.f32.mrf.mxu0  ;;  %1360 = vmatprep.subr.mxu1 %v280_v13 }
 0x13b   : > { %1361 = vmatpush3.msra.mxu1 %v280_v13  ;;  %1362 = vmatprep.mubr.msk.f32.mxu1 %vm286_vm0, %v831_v21 }
 0x13c   : > { %1363 = vmatmul.mubr.msk.f32.vlgmr.msra.gmra.mxu1 %vm286_vm0, %v1357_v20  ;;  %v1371_v22 = vpop.f32.mrf.mxu0  ;;  %1372 = vmatprep.subr.mxu1 %v281_v12 }
 0x13d   : > { %1373 = vmatpush3.msra.mxu1 %v281_v12 }
 0x13e   : > { %v989_v23 = vpop.f32.mrf.mxu0  ;;  %1374 = vmatprep.subr.mxu1 %v280_v13 }
 0x13f   : > { %1375 = vmatpush3.msra.mxu1 %v280_v13  ;;  %1376 = vmatprep.mubr.msk.f32.mxu1 %vm286_vm0, %v989_v23 }
 0x140   : > { %1377 = vmatmul.mubr.msk.f32.vlgmr.msra.gmra.mxu1 %vm286_vm0, %v1371_v22 }
 0x1f0   : > { %v1322_v24 = vpop.f32.mrf.mxu1 }
 0x1f1   : > { %v1080_v31 = vmul.f32 %v1322_v24, %v1322_v24 }
 0x1f2   : > { %v440_v25 = vpop.f32.mrf.mxu1 }
 0x1f3   : > { %v1079_v34 = vmul.f32 %v440_v25, %v440_v25 }
 0x1f4   : > { %v1336_v26 = vpop.f32.mrf.mxu1 }
 0x1f5   : > { %v1082_v29 = vmul.f32 %v1336_v26, %v1336_v26  ;;  %v1084_v47 = vmul.f32 %v1336_v26, %v1322_v24 }
 0x1f6   : > { %v596_v27 = vpop.f32.mrf.mxu1 }
 0x1f7   : > { %v1081_v32 = vmul.f32 %v596_v27, %v596_v27  ;;  %v1102_v35 = vadd.f32 %v1082_v29, %v1080_v31  ;;  %v1083_v52 = vmul.f32 %v596_v27, %v440_v25  ;;  %v1092_v57 = vmul.f32 2.0, %v1084_v47 }
 0x1f8   : > { %v1350_v28 = vpop.f32.mrf.mxu1 }
 0x1f9   : > { %v1086_v36 = vsub.f32 %v1350_v28, %v1080_v31  ;;  %v1101_v39 = vadd.f32 %v1081_v32, %v1079_v34  ;;  %v1104_v44 = vadd.f32 0.0001, %v1102_v35  ;;  %v1091_v59 = vmul.f32 2.0, %v1083_v52 }
 0x1fa   : > { %v754_v30 = vpop.f32.mrf.mxu1  ;;  %v1094_v61 = vadd.f32 0.0001, %v1092_v57 }
 0x1fb   : > { %v1085_v40 = vsub.f32 %v754_v30, %v1079_v34  ;;  %v1103_v48 = vadd.f32 0.0001, %v1101_v39  ;;  %v1093_v63 = vadd.f32 0.0001, %v1091_v59 }
 0x1fc   : > { %v1364_v33 = vpop.f32.mrf.mxu1 }
 0x1fd   : > { %v1088_v37 = vsub.f32 %v1364_v33, %v1082_v29 }
 0x1fe   : > { %v912_v38 = vpop.f32.mrf.mxu1 }
 0x1ff   : > { %v1106_v41 = vadd.f32 %v1088_v37, %v1086_v36  ;;  %v1087_v42 = vsub.f32 %v912_v38, %v1081_v32 }
 0x200   : > { %v1378_v43 = vpop.f32.mrf.mxu1 }
 0x201   : > { %v1108_v45 = vadd.f32 0.0009, %v1106_v41  ;;  %v1105_v46 = vadd.f32 %v1087_v42, %v1085_v40  ;;  %v1090_v54 = vsub.f32 %v1378_v43, %v1084_v47 }
 0x202   : > { %v1070_v51 = vpop.f32.mrf.mxu1 }
 0x203   : > { %v1110_v49 = vmul.f32 %v1108_v45, %v1104_v44  ;;  %v1107_v50 = vadd.f32 0.0009, %v1105_v46  ;;  %v1089_v55 = vsub.f32 %v1070_v51, %v1083_v52  ;;  %v1096_v56 = vmul.f32 2.0, %v1090_v54 }
 0x205   : > { %1448 = vrcp.f32 %v1110_v49  ;;  %v1109_v53 = vmul.f32 %v1107_v50, %v1103_v48  ;;  %v1095_v58 = vmul.f32 2.0, %v1089_v55  ;;  %v1098_v60 = vadd.f32 0.0009, %v1096_v56 }
 0x207   : > { %1450 = vrcp.f32 %v1109_v53  ;;  %v1097_v62 = vadd.f32 0.0009, %v1095_v58  ;;  %v1100_v0 = vmul.f32 %v1098_v60, %v1094_v61 }
 0x209   : > { %v1099_v2 = vmul.f32 %v1097_v62, %v1093_v63 }
 0x212   : > { %v1449_v1 = vpop.eup %1448 }
 0x213   : > { %v1114_v3 = vmul.f32 %v1449_v1, %v1100_v0 }
 0x214   : > { %v1451_v4 = vpop.eup %1450 }
 0x215   : > { %v1113_v5 = vmul.f32 %v1451_v4, %v1099_v2  ;;  %v1116_v7 = vsel %vm286_vm0, %v1114_v3, 0.0 }
 0x217   : > { %v1115_v6 = vsel %vm286_vm0, %v1113_v5, 0.0 }
 0x218   : > { %v1117_v8 = vadd.f32 %v1116_v7, %v1115_v6 }
 0x21a   : > { %1118 = vadd.xlane.f32.xlu0 %v1117_v8 }
 0x2a3   : > { %v1119_v9 = vpop.xlane.xlu0 %1118 }
 0x2a4   : > { %v1120_v10 = vrot.slane %v1119_v9, 4 }
 0x2a6   : > { %v1121_v11 = vadd.f32 %v1120_v10, %v1119_v9 }
 0x2a8   : > { %v1122_v12 = vrot.slane %v1121_v11, 2 }
 0x2aa   : > { %v1123_v13 = vadd.f32 %v1122_v12, %v1121_v11 }
 0x2ac   : > { %v1124_v14 = vrot.slane %v1123_v13, 1 }
 0x2ae   : > { %v1125_v15 = vadd.f32 %v1124_v14, %v1123_v13 }
 0x2b0   : > { %1379 = vpush %v1125_v15 }
 0x2e1   : > { %s1380_s25 = spop %1379 }
 0x2e2   : > { %s1127_s30 = smul.f32 0.00390625, %s1380_s25 }
 0x2e4   : > { %v1128_v16 = vstv %s1127_s30 }
 0x2e5   : > { %1130 = vst.msk [vmem:[%s277_s29] sm:$0x1] %vm1129_vm1, %v1128_v16 }
 0x2e6 PF: > { %p13_p8 = scmp.ge.s32.totalorder %s1657_s20, 10   ;;  %s1880_s15 = smov %s1594_s16 }
 0x2e7   : > { %s1881_s16 = smov %s1598_s17  ;;  %s1882_s17 = smov %s1667_s23 }
 0x2e8   : > { %s1883_s18 = smov %s1657_s20  ;;  %15 = sbr.rel (!%p13_p8) target bundleno = 3 (0x3), region = 94 }
 0x2ed   :  { %1148 = vsyncpa [#allocation3], 1 }
 0x2ee   :  { %1150 = vsyncpa [#allocation3 + $0x1], 1 }
 0x2ef   :  { %1151 = vsyncpa [#allocation5], 1 }

</bundles_post_ra>
